<compile_context>
chip_gen: v5e
topology: v5e:2x2
jax: 0.10.0
libtpu: 0.0.40
codegen_flags: <defaults>
</compile_context>

<pallas_src>
import functools

import jax
import jax.numpy as jnp
from jax import lax
from jax.experimental import pallas as pl
from jax.experimental.pallas import tpu as pltpu


# ----------------------------------------------------------------------------------
# Host-side weight preparation (shared by the Pallas wrapper and the jnp mirror)
# ----------------------------------------------------------------------------------
def _prepare_branch(params, prefix, width, rank, *, scale, compute_dtype):
    """Head-major permutation of the last layer, output scaling (1/n fold for phi),
    bf16 cast of the MXU weight matrices; biases kept f32 as (1, dim) rows."""
    wr = width * rank
    w4 = params[f"{prefix}_w4"]
    b4 = params[f"{prefix}_b4"]
    # PyTorch's .reshape(..., width, rank) means flat column index = d*rank + h.
    # Re-order to h*width + d so each head's (width, width) block of M is contiguous and
    # the per-head sum collapses into one MXU matmul.
    w4 = (w4.reshape(w4.shape[0], width, rank).transpose(0, 2, 1)
          .reshape(w4.shape[0], wr) * scale)
    b4 = b4.reshape(width, rank).T.reshape(wr) * scale

    row = lambda x: x.reshape(1, -1).astype(jnp.float32)
    cvt = lambda x: x.astype(compute_dtype)
    return [
        params[f"{prefix}_w1"].astype(jnp.float32), row(params[f"{prefix}_b1"]),  # VPU layer
        cvt(params[f"{prefix}_w2"]), row(params[f"{prefix}_b2"]),
        cvt(params[f"{prefix}_w3"]), row(params[f"{prefix}_b3"]),
        cvt(w4), row(b4),
    ]


def _pick_tile_n(n, max_tile):
    """Largest n-tile that divides n, is sublane aligned (multiple of 8) and <= max_tile."""
    if n <= max_tile:
        return n
    t = (max_tile // 8) * 8
    while t >= 8:
        if n % t == 0:
            return t
        t -= 8
    return n  # no aligned divisor: fall back to a single full-length tile


def _vmem_limit_bytes(tn, width, rank, compute_dtype):
    """Size the scoped-VMEM limit from the per-step footprint (review item), with lane
    padding (width<128 pads to 128 lanes, `a` pads 2->128) accounted for."""
    wr = width * rank
    lane = lambda d: max(d, 128)
    cbytes = jnp.dtype(compute_dtype).itemsize
    act = 4 * tn * (lane(2) + lane(64) + lane(128) + lane(256) + lane(wr) + lane(width))
    weights = cbytes * (64 * 128 + 128 * 256 + 256 * wr) + 4 * (2 * 64 + 64 + 128 + 256 + wr)
    m_block = 4 * wr * lane(width)
    est = 2 * act + 2 * weights + 2 * m_block        # double-buffered blocks + slack
    return int(min(96 * 2**20, max(32 * 2**20, 2 * est)))


# ----------------------------------------------------------------------------------
# Kernel bodies
# ----------------------------------------------------------------------------------
def _dense(x, w_ref, b_ref, *, relu):
    """Linear(+ReLU): compute-dtype operands (bf16 or f32), f32 accumulation on the MXU."""
    w = w_ref[...]
    y = jnp.dot(x.astype(w.dtype), w, preferred_element_type=jnp.float32) + b_ref[...]
    return jnp.maximum(y, 0.0) if relu else y


def _layer1_vpu(a, w1_ref, b1_ref):
    """First Linear (in_features = 2) as broadcast FMAs on the VPU -- avoids a degenerate
    K=2 MXU matmul (perf-review item)."""
    w1 = w1_ref[...].astype(jnp.float32)                       # (2, 64)
    h = a[:, 0:1] * w1[0:1, :] + a[:, 1:2] * w1[1:2, :] + b1_ref[...]
    return jnp.maximum(h, 0.0)


def _mlp(a, w1, b1, w2, b2, w3, b3, w4, b4):
    h = _layer1_vpu(a, w1, b1)
    h = _dense(h, w2, b2, relu=True)
    h = _dense(h, w3, b3, relu=True)
    return _dense(h, w4, b4, relu=False)                       # (tile_n, rank*width), f32


def _attn_map_kernel(a_ref, v_ref, w1, b1, w2, b2, w3, b3, w4, b4, m_ref, *, compute_dtype):
    """Pass 1: M[b] += K_tile^T @ v_tile, accumulated in the f32 output block over n-tiles."""
    @pl.when(pl.program_id(1) == 0)
    def _init():
        m_ref[...] = jnp.zeros_like(m_ref)

    a = a_ref[0]                                               # (tile_n, 2)
    v = v_ref[0]                                               # (tile_n, width)
    k = _mlp(a, w1, b1, w2, b2, w3, b3, w4, b4)                # (tile_n, rank*width)

    # M[h*width + d, c] += sum_m K_h[m, d] * V[m, c]   (all heads stacked; contract tile rows)
    contrib = lax.dot_general(k.astype(compute_dtype), v.astype(compute_dtype),
                              (((0,), (0,)), ((), ())),
                              preferred_element_type=jnp.float32)
    m_ref[0] = m_ref[0] + contrib


def _apply_kernel(a_ref, m_ref, w1, b1, w2, b2, w3, b3, w4, b4, o_ref, *, compute_dtype):
    """Pass 2: out_tile = Q_tile @ M[b]   (1/n already folded into phi's last layer)."""
    a = a_ref[0]                                               # (tile_n, 2)
    q = _mlp(a, w1, b1, w2, b2, w3, b3, w4, b4)                # (tile_n, rank*width)
    m = m_ref[0].astype(compute_dtype)                         # (rank*width, width)
    out = jnp.dot(q.astype(compute_dtype), m, preferred_element_type=jnp.float32)
    o_ref[0] = out.astype(o_ref.dtype)


# ----------------------------------------------------------------------------------
# Pallas wrapper
# ----------------------------------------------------------------------------------
def lowrank1d(v, a, params, *, width, rank, compute_dtype=jnp.bfloat16, max_tile_n=512):
    b, n, w_in = v.shape
    assert w_in == width, (w_in, width)
    wr = width * rank
    tn = _pick_tile_n(n, max_tile_n)
    n_tiles = n // tn

    psi_w = _prepare_branch(params, "psi", width, rank, scale=1.0, compute_dtype=compute_dtype)
    phi_w = _prepare_branch(params, "phi", width, rank, scale=1.0 / n, compute_dtype=compute_dtype)

    tile_map = lambda bi, ti: (bi, ti, 0)     # tiled over (batch, n-tile)
    m_map = lambda bi, ti: (bi, 0, 0)         # per-batch block, constant over n-tiles
    w_map = lambda bi, ti: (0, 0)             # resident weights, fetched once
    wspecs = lambda ws: [pl.BlockSpec(w.shape, w_map) for w in ws]

    vmem_limit = _vmem_limit_bytes(tn, width, rank, compute_dtype)

    mlp_flops = 2 * b * n * (2 * 64 + 64 * 128 + 128 * 256 + 256 * wr)
    attn_flops = 2 * b * n * wr * width
    wbytes = lambda ws: int(sum(int(x.size) * x.dtype.itemsize for x in ws))
    a_bytes = int(a.size) * 4
    m_bytes = int(b * wr * width) * 4
    vo_bytes = int(b * n * width) * 4

    # ---- pass 1: M[b] = K_full(b)^T @ V(b), accumulated over n-tiles ------------------
    attn_map = pl.pallas_call(
        functools.partial(_attn_map_kernel, compute_dtype=compute_dtype),
        out_shape=jax.ShapeDtypeStruct((b, wr, width), jnp.float32),
        grid=(b, n_tiles),
        in_specs=[pl.BlockSpec((1, tn, 2), tile_map),
                  pl.BlockSpec((1, tn, width), tile_map)] + wspecs(psi_w),
        out_specs=pl.BlockSpec((1, wr, width), m_map),
        compiler_params=pltpu.CompilerParams(
            dimension_semantics=("parallel", "arbitrary"),
            vmem_limit_bytes=vmem_limit),
        cost_estimate=pl.CostEstimate(
            flops=mlp_flops + attn_flops, transcendentals=0,
            bytes_accessed=a_bytes + vo_bytes + m_bytes + wbytes(psi_w)),
    )(a, v, *psi_w)

    # ---- pass 2: out[b, tile] = Q_tile @ M[b] ------------------------------------------
    out = pl.pallas_call(
        functools.partial(_apply_kernel, compute_dtype=compute_dtype),
        out_shape=jax.ShapeDtypeStruct((b, n, width), v.dtype),
        grid=(b, n_tiles),
        in_specs=[pl.BlockSpec((1, tn, 2), tile_map),
                  pl.BlockSpec((1, wr, width), m_map)] + wspecs(phi_w),
        out_specs=pl.BlockSpec((1, tn, width), tile_map),
        compiler_params=pltpu.CompilerParams(
            dimension_semantics=("parallel", "parallel"),
            vmem_limit_bytes=vmem_limit),
        cost_estimate=pl.CostEstimate(
            flops=mlp_flops + attn_flops, transcendentals=0,
            bytes_accessed=a_bytes + m_bytes + vo_bytes + wbytes(phi_w)),
    )(a, attn_map, *phi_w)
    return out


# ----------------------------------------------------------------------------------
# References for validation
# ----------------------------------------------------------------------------------
def reference(v, a, params, *, width, rank):
    """Exact (f32, HIGHEST precision) mirror of the PyTorch forward."""
    b, n, _ = v.shape
    hi = lax.Precision.HIGHEST

    def mlp(x, prefix):
        h = x
        for i in (1, 2, 3):
            h = jnp.maximum(
                jnp.einsum("bnk,kj->bnj", h, params[f"{prefix}_w{i}"], precision=hi)
                + params[f"{prefix}_b{i}"], 0.0)
        return (jnp.einsum("bnk,kj->bnj", h, params[f"{prefix}_w4"], precision=hi)
                + params[f"{prefix}_b4"])

    phi_eval = mlp(a, "phi").reshape(b, n, width, rank)
    psi_eval = mlp(a, "psi").reshape(b, n, width, rank)
    Q = jnp.transpose(phi_eval, (0, 3, 1, 2))                  # (b, rank, n, width)
    K = jnp.transpose(psi_eval, (0, 3, 1, 2))
    V = jnp.broadcast_to(v[:, None], (b, rank, n, width))
    attn_map = jnp.einsum("bhmd,bhmc->bhdc", K, V, precision=hi)
    attn_out = jnp.einsum("bhld,bhdc->blc", Q, attn_map, precision=hi)
    return attn_out / n


def lowrank1d_jnp(v, a, params, *, width, rank, compute_dtype=jnp.bfloat16):
    """Pure-JAX mirror of the kernel algorithm with identical dtype casts -- used to
    validate the reduced-precision (bf16) fast path apples-to-apples."""
    b, n, _ = v.shape
    psi_w = _prepare_branch(params, "psi", width, rank, scale=1.0, compute_dtype=compute_dtype)
    phi_w = _prepare_branch(params, "phi", width, rank, scale=1.0 / n, compute_dtype=compute_dtype)

    def branch(weights):
        w1, b1, w2, b2, w3, b3, w4, b4 = weights
        w1f = w1.astype(jnp.float32)
        h = jnp.maximum(a[..., 0:1] * w1f[0] + a[..., 1:2] * w1f[1] + b1[0], 0.0)
        for w, bb in ((w2, b2), (w3, b3)):
            h = jnp.maximum(
                jnp.einsum("bnk,kj->bnj", h.astype(w.dtype), w,
                           preferred_element_type=jnp.float32) + bb[0], 0.0)
        return (jnp.einsum("bnk,kj->bnj", h.astype(w4.dtype), w4,
                           preferred_element_type=jnp.float32) + b4[0])

    k = branch(psi_w)                                          # (b, n, rank*width)
    q = branch(phi_w)                                          # (b, n, rank*width), 1/n folded
    cdt = compute_dtype
    m = jnp.einsum("bnk,bnc->bkc", k.astype(cdt), v.astype(cdt),
                   preferred_element_type=jnp.float32)
    out = jnp.einsum("bnk,bkc->bnc", q.astype(cdt), m.astype(cdt),
                     preferred_element_type=jnp.float32)
    return out.astype(v.dtype)


# ----------------------------------------------------------------------------------
# Self-test
# ----------------------------------------------------------------------------------
if __name__ == "__main__":
    key = jax.random.PRNGKey(0)
    batch, n, width, rank = 2, 64, 32, 2
    layer_dims = [2, 64, 128, 256, width * rank]

    keys = jax.random.split(key, 20)

    def nrm(k, shape, scale=0.2):
        return jax.random.normal(k, shape, jnp.float32) * scale

    params = {}
    kidx = 0
    for prefix in ("phi", "psi"):
        for i in range(4):
            params[f"{prefix}_w{i+1}"] = nrm(keys[kidx], (layer_dims[i], layer_dims[i + 1]))
            kidx += 1
            params[f"{prefix}_b{i+1}"] = nrm(keys[kidx], (layer_dims[i + 1],))
            kidx += 1

    v = jax.random.normal(keys[kidx], (batch, n, width), jnp.float32); kidx += 1
    a = jax.random.normal(keys[kidx], (batch, n, 2), jnp.float32)

    # Production fast path (bf16 operands, f32 accumulation).
    out_bf16 = jax.block_until_ready(lowrank1d(v, a, params, width=width, rank=rank))
    # Full-precision path (same kernels, f32 operands) -- structural correctness check.
    out_f32 = jax.block_until_ready(
        lowrank1d(v, a, params, width=width, rank=rank, compute_dtype=jnp.float32))

    assert out_bf16.shape == (batch, n, width), out_bf16.shape
    assert out_f32.shape == (batch, n, width), out_f32.shape

    ref = reference(v, a, params, width=width, rank=rank)
    mirror_bf16 = lowrank1d_jnp(v, a, params, width=width, rank=rank)

    # 1) f32 kernel path must match the exact PyTorch-equivalent reference tightly.
    err_f32 = float(jnp.max(jnp.abs(out_f32 - ref)))
    if not bool(jnp.allclose(out_f32, ref, rtol=1e-2, atol=1e-2)):
        raise AssertionError(f"f32 Pallas kernel mismatch vs exact reference, "
                             f"max abs err = {err_f32}")

    # 2) bf16 fast path must match the numerically-identical pure-JAX mirror (same casts),
    #    which isolates any Pallas/Mosaic lowering bug from expected bf16 rounding.
    err_bf16 = float(jnp.max(jnp.abs(out_bf16 - mirror_bf16)))
    if not bool(jnp.allclose(out_bf16, mirror_bf16, rtol=1e-2, atol=1e-2)):
        raise AssertionError(f"bf16 Pallas kernel mismatch vs bf16 jnp mirror, "
                             f"max abs err = {err_bf16}")

    print("KERNEL_OK")
</pallas_src>

<mosaic_0001>
module attributes {stable_mosaic.version = 11 : i64} {
  func.func @_attn_map_kernel(%arg0: i32, %arg1: i32, %arg2: memref<1x64x2xf32, #tpu.memory_space<vmem>>, %arg3: memref<1x64x32xf32, #tpu.memory_space<vmem>>, %arg4: memref<2x64xf32, #tpu.memory_space<vmem>>, %arg5: memref<1x64xf32, #tpu.memory_space<vmem>>, %arg6: memref<64x128xbf16, #tpu.memory_space<vmem>>, %arg7: memref<1x128xf32, #tpu.memory_space<vmem>>, %arg8: memref<128x256xbf16, #tpu.memory_space<vmem>>, %arg9: memref<1x256xf32, #tpu.memory_space<vmem>>, %arg10: memref<256x64xbf16, #tpu.memory_space<vmem>>, %arg11: memref<1x64xf32, #tpu.memory_space<vmem>>, %arg12: memref<1x64x32xf32, #tpu.memory_space<vmem>>) attributes {dimension_semantics = [#tpu.dimension_semantics<parallel>, #tpu.dimension_semantics<arbitrary>], iteration_bounds = array<i64: 2, 1>, scalar_prefetch = 0 : i64, scratch_operands = 0 : i64, tpu.core_type = #tpu.core_type<tc>, window_params = [{transform_indices = @transform_0, window_bounds = array<i64: 1, 64, 2>}, {transform_indices = @transform_1, window_bounds = array<i64: 1, 64, 32>}, {pipeline_mode = #tpu.pipeline_mode<synchronous>, transform_indices = @transform_2, window_bounds = array<i64: 2, 64>}, {pipeline_mode = #tpu.pipeline_mode<synchronous>, transform_indices = @transform_3, window_bounds = array<i64: 1, 64>}, {pipeline_mode = #tpu.pipeline_mode<synchronous>, transform_indices = @transform_4, window_bounds = array<i64: 64, 128>}, {pipeline_mode = #tpu.pipeline_mode<synchronous>, transform_indices = @transform_5, window_bounds = array<i64: 1, 128>}, {pipeline_mode = #tpu.pipeline_mode<synchronous>, transform_indices = @transform_6, window_bounds = array<i64: 128, 256>}, {pipeline_mode = #tpu.pipeline_mode<synchronous>, transform_indices = @transform_7, window_bounds = array<i64: 1, 256>}, {pipeline_mode = #tpu.pipeline_mode<synchronous>, transform_indices = @transform_8, window_bounds = array<i64: 256, 64>}, {pipeline_mode = #tpu.pipeline_mode<synchronous>, transform_indices = @transform_9, window_bounds = array<i64: 1, 64>}, {transform_indices = @transform_10, window_bounds = array<i64: 1, 64, 32>}]} {
    %c0_i32 = arith.constant 0 : i32
    %0 = arith.cmpi eq, %arg1, %c0_i32 : i32
    %1 = arith.extui %0 : i1 to i32
    %c0_i32_0 = arith.constant 0 : i32
    %2 = arith.cmpi ne, %1, %c0_i32_0 : i32
    scf.if %2 {
      %cst_34 = arith.constant 0.000000e+00 : f32
      %55 = vector.broadcast %cst_34 : f32 to vector<1x64x32xf32>
      %c0_35 = arith.constant 0 : index
      %c0_36 = arith.constant 0 : index
      %c0_37 = arith.constant 0 : index
      %56 = vector.load %arg12[%c0_35, %c0_36, %c0_37] : memref<1x64x32xf32, #tpu.memory_space<vmem>>, vector<1x64x32xf32>
      tpu.vector_store %arg12[%c0_35, %c0_36, %c0_37], %55 {strides = array<i32>} : memref<1x64x32xf32, #tpu.memory_space<vmem>>, vector<1x64x32xf32>,
    } else {
    }
    %c0 = arith.constant 0 : index
    %c0_1 = arith.constant 0 : index
    %c0_2 = arith.constant 0 : index
    %3 = vector.load %arg2[%c0, %c0_1, %c0_2] : memref<1x64x2xf32, #tpu.memory_space<vmem>>, vector<1x64x2xf32>
    %4 = vector.shape_cast %3 : vector<1x64x2xf32> to vector<64x2xf32>
    %c0_3 = arith.constant 0 : index
    %c0_4 = arith.constant 0 : index
    %c0_5 = arith.constant 0 : index
    %5 = vector.load %arg3[%c0_3, %c0_4, %c0_5] : memref<1x64x32xf32, #tpu.memory_space<vmem>>, vector<1x64x32xf32>
    %6 = vector.shape_cast %5 : vector<1x64x32xf32> to vector<64x32xf32>
    %c0_6 = arith.constant 0 : index
    %c0_7 = arith.constant 0 : index
    %7 = vector.load %arg4[%c0_6, %c0_7] : memref<2x64xf32, #tpu.memory_space<vmem>>, vector<2x64xf32>
    %8 = vector.extract_strided_slice %4 {offsets = [0, 0], sizes = [64, 1], strides = [1, 1]} : vector<64x2xf32> to vector<64x1xf32>
    %9 = vector.extract_strided_slice %7 {offsets = [0, 0], sizes = [1, 64], strides = [1, 1]} : vector<2x64xf32> to vector<1x64xf32>
    %10 = vector.broadcast %8 : vector<64x1xf32> to vector<64x64xf32>
    %11 = vector.broadcast %9 : vector<1x64xf32> to vector<64x64xf32>
    %12 = arith.mulf %10, %11 : vector<64x64xf32>
    %13 = vector.extract_strided_slice %4 {offsets = [0, 1], sizes = [64, 1], strides = [1, 1]} : vector<64x2xf32> to vector<64x1xf32>
    %14 = vector.extract_strided_slice %7 {offsets = [1, 0], sizes = [1, 64], strides = [1, 1]} : vector<2x64xf32> to vector<1x64xf32>
    %15 = vector.broadcast %13 : vector<64x1xf32> to vector<64x64xf32>
    %16 = vector.broadcast %14 : vector<1x64xf32> to vector<64x64xf32>
    %17 = arith.mulf %15, %16 : vector<64x64xf32>
    %18 = arith.addf %12, %17 : vector<64x64xf32>
    %c0_8 = arith.constant 0 : index
    %c0_9 = arith.constant 0 : index
    %19 = vector.load %arg5[%c0_8, %c0_9] : memref<1x64xf32, #tpu.memory_space<vmem>>, vector<1x64xf32>
    %20 = vector.broadcast %19 : vector<1x64xf32> to vector<64x64xf32>
    %21 = arith.addf %18, %20 : vector<64x64xf32>
    %cst = arith.constant 0.000000e+00 : f32
    %22 = vector.broadcast %cst : f32 to vector<64x64xf32>
    %23 = arith.maximumf %21, %22 : vector<64x64xf32>
    %c0_10 = arith.constant 0 : index
    %c0_11 = arith.constant 0 : index
    %24 = vector.load %arg6[%c0_10, %c0_11] : memref<64x128xbf16, #tpu.memory_space<vmem>>, vector<64x128xbf16>
    %25 = arith.truncf %23 : vector<64x64xf32> to vector<64x64xbf16>
    %cst_12 = arith.constant dense<0.000000e+00> : vector<64x128xf32>
    %26 = tpu.matmul %25, %24, %cst_12 {dimension_numbers = #tpu.dot_dimension_numbers<[1], [0], [0], [1], [0, 0, 1, 1], [], []>} : vector<64x64xbf16>, vector<64x128xbf16>, vector<64x128xf32> -> vector<64x128xf32>
    %c0_13 = arith.constant 0 : index
    %c0_14 = arith.constant 0 : index
    %27 = vector.load %arg7[%c0_13, %c0_14] : memref<1x128xf32, #tpu.memory_space<vmem>>, vector<1x128xf32>
    %28 = vector.broadcast %27 : vector<1x128xf32> to vector<64x128xf32>
    %29 = arith.addf %26, %28 : vector<64x128xf32>
    %cst_15 = arith.constant 0.000000e+00 : f32
    %30 = vector.broadcast %cst_15 : f32 to vector<64x128xf32>
    %31 = arith.maximumf %29, %30 : vector<64x128xf32>
    %c0_16 = arith.constant 0 : index
    %c0_17 = arith.constant 0 : index
    %32 = vector.load %arg8[%c0_16, %c0_17] : memref<128x256xbf16, #tpu.memory_space<vmem>>, vector<128x256xbf16>
    %33 = arith.truncf %31 : vector<64x128xf32> to vector<64x128xbf16>
    %cst_18 = arith.constant dense<0.000000e+00> : vector<64x256xf32>
    %34 = tpu.matmul %33, %32, %cst_18 {dimension_numbers = #tpu.dot_dimension_numbers<[1], [0], [0], [1], [0, 0, 1, 1], [], []>} : vector<64x128xbf16>, vector<128x256xbf16>, vector<64x256xf32> -> vector<64x256xf32>
    %c0_19 = arith.constant 0 : index
    %c0_20 = arith.constant 0 : index
    %35 = vector.load %arg9[%c0_19, %c0_20] : memref<1x256xf32, #tpu.memory_space<vmem>>, vector<1x256xf32>
    %36 = vector.broadcast %35 : vector<1x256xf32> to vector<64x256xf32>
    %37 = arith.addf %34, %36 : vector<64x256xf32>
    %cst_21 = arith.constant 0.000000e+00 : f32
    %38 = vector.broadcast %cst_21 : f32 to vector<64x256xf32>
    %39 = arith.maximumf %37, %38 : vector<64x256xf32>
    %c0_22 = arith.constant 0 : index
    %c0_23 = arith.constant 0 : index
    %40 = vector.load %arg10[%c0_22, %c0_23] : memref<256x64xbf16, #tpu.memory_space<vmem>>, vector<256x64xbf16>
    %41 = arith.truncf %39 : vector<64x256xf32> to vector<64x256xbf16>
    %cst_24 = arith.constant dense<0.000000e+00> : vector<64x64xf32>
    %42 = tpu.matmul %41, %40, %cst_24 {dimension_numbers = #tpu.dot_dimension_numbers<[1], [0], [0], [1], [0, 0, 1, 1], [], []>} : vector<64x256xbf16>, vector<256x64xbf16>, vector<64x64xf32> -> vector<64x64xf32>
    %c0_25 = arith.constant 0 : index
    %c0_26 = arith.constant 0 : index
    %43 = vector.load %arg11[%c0_25, %c0_26] : memref<1x64xf32, #tpu.memory_space<vmem>>, vector<1x64xf32>
    %44 = vector.broadcast %43 : vector<1x64xf32> to vector<64x64xf32>
    %45 = arith.addf %42, %44 : vector<64x64xf32>
    %46 = arith.truncf %45 : vector<64x64xf32> to vector<64x64xbf16>
    %47 = arith.truncf %6 : vector<64x32xf32> to vector<64x32xbf16>
    %cst_27 = arith.constant dense<0.000000e+00> : vector<64x32xf32>
    %48 = tpu.matmul %46, %47, %cst_27 {dimension_numbers = #tpu.dot_dimension_numbers<[0], [0], [1], [1], [0, 1, 1, 1], [], []>} : vector<64x64xbf16>, vector<64x32xbf16>, vector<64x32xf32> -> vector<64x32xf32>
    %c0_28 = arith.constant 0 : index
    %c0_29 = arith.constant 0 : index
    %c0_30 = arith.constant 0 : index
    %49 = vector.load %arg12[%c0_28, %c0_29, %c0_30] : memref<1x64x32xf32, #tpu.memory_space<vmem>>, vector<1x64x32xf32>
    %50 = vector.shape_cast %49 : vector<1x64x32xf32> to vector<64x32xf32>
    %51 = arith.addf %50, %48 : vector<64x32xf32>
    %c0_31 = arith.constant 0 : index
    %c0_32 = arith.constant 0 : index
    %c0_33 = arith.constant 0 : index
    %52 = vector.load %arg12[%c0_31, %c0_32, %c0_33] : memref<1x64x32xf32, #tpu.memory_space<vmem>>, vector<1x64x32xf32>
    %53 = vector.shape_cast %52 : vector<1x64x32xf32> to vector<64x32xf32>
    %54 = vector.shape_cast %51 : vector<64x32xf32> to vector<1x64x32xf32>
    tpu.vector_store %arg12[%c0_31, %c0_32, %c0_33], %54 {strides = array<i32>} : memref<1x64x32xf32, #tpu.memory_space<vmem>>, vector<1x64x32xf32>,
    return
  }
  func.func @transform_0(%arg0: i32, %arg1: i32) -> (i32, i32, i32) {
    %c0_i32 = arith.constant 0 : i32
    %c0_i32_0 = arith.constant 0 : i32
    return %arg0, %arg1, %c0_i32 : i32, i32, i32
  }
  func.func @transform_1(%arg0: i32, %arg1: i32) -> (i32, i32, i32) {
    %c0_i32 = arith.constant 0 : i32
    %c0_i32_0 = arith.constant 0 : i32
    return %arg0, %arg1, %c0_i32 : i32, i32, i32
  }
  func.func @transform_2(%arg0: i32, %arg1: i32) -> (i32, i32) {
    %c0_i32 = arith.constant 0 : i32
    %c0_i32_0 = arith.constant 0 : i32
    %c0_i32_1 = arith.constant 0 : i32
    return %c0_i32, %c0_i32_0 : i32, i32
  }
  func.func @transform_3(%arg0: i32, %arg1: i32) -> (i32, i32) {
    %c0_i32 = arith.constant 0 : i32
    %c0_i32_0 = arith.constant 0 : i32
    %c0_i32_1 = arith.constant 0 : i32
    return %c0_i32, %c0_i32_0 : i32, i32
  }
  func.func @transform_4(%arg0: i32, %arg1: i32) -> (i32, i32) {
    %c0_i32 = arith.constant 0 : i32
    %c0_i32_0 = arith.constant 0 : i32
    %c0_i32_1 = arith.constant 0 : i32
    return %c0_i32, %c0_i32_0 : i32, i32
  }
  func.func @transform_5(%arg0: i32, %arg1: i32) -> (i32, i32) {
    %c0_i32 = arith.constant 0 : i32
    %c0_i32_0 = arith.constant 0 : i32
    %c0_i32_1 = arith.constant 0 : i32
    return %c0_i32, %c0_i32_0 : i32, i32
  }
  func.func @transform_6(%arg0: i32, %arg1: i32) -> (i32, i32) {
    %c0_i32 = arith.constant 0 : i32
    %c0_i32_0 = arith.constant 0 : i32
    %c0_i32_1 = arith.constant 0 : i32
    return %c0_i32, %c0_i32_0 : i32, i32
  }
  func.func @transform_7(%arg0: i32, %arg1: i32) -> (i32, i32) {
    %c0_i32 = arith.constant 0 : i32
    %c0_i32_0 = arith.constant 0 : i32
    %c0_i32_1 = arith.constant 0 : i32
    return %c0_i32, %c0_i32_0 : i32, i32
  }
  func.func @transform_8(%arg0: i32, %arg1: i32) -> (i32, i32) {
    %c0_i32 = arith.constant 0 : i32
    %c0_i32_0 = arith.constant 0 : i32
    %c0_i32_1 = arith.constant 0 : i32
    return %c0_i32, %c0_i32_0 : i32, i32
  }
  func.func @transform_9(%arg0: i32, %arg1: i32) -> (i32, i32) {
    %c0_i32 = arith.constant 0 : i32
    %c0_i32_0 = arith.constant 0 : i32
    %c0_i32_1 = arith.constant 0 : i32
    return %c0_i32, %c0_i32_0 : i32, i32
  }
  func.func @transform_10(%arg0: i32, %arg1: i32) -> (i32, i32, i32) {
    %c0_i32 = arith.constant 0 : i32
    %c0_i32_0 = arith.constant 0 : i32
    %c0_i32_1 = arith.constant 0 : i32
    return %arg0, %c0_i32, %c0_i32_0 : i32, i32, i32
  }
}

</mosaic_0001>

<bundles_post_ra>
// kernel: tpu_custom_call.1
= control target key start
LH: loop header
LB: loop body
LE: loop exit
PB: predicated region body
PF: predicated region fallthrough
CT: control target
= control target key end

     0   :  { %s1554_s13 = smov 0   ;;  %s1556_s14 = smov 0   ;;  %s1846_s0 = inlined_call_operand.vmem [shape: f32[2,64,2], index: 0, kind: input, shape index: {}]   ;;  %s1847_s1 = inlined_call_operand.vmem [shape: f32[2,64,32], index: 1, kind: input, shape index: {}]   ;;  %s1848_s2 = inlined_call_operand.vmem [shape: f32[2,64], index: 2, kind: input, shape index: {}]   ;;  %s1849_s3 = inlined_call_operand.vmem [shape: f32[1,64], index: 3, kind: input, shape index: {}]   ;;  %s1850_s4 = inlined_call_operand.vmem [shape: bf16[64,128], index: 4, kind: input, shape index: {}]   ;;  %s1851_s5 = inlined_call_operand.vmem [shape: f32[1,128], index: 5, kind: input, shape index: {}]   ;;  %s1852_s6 = inlined_call_operand.vmem [shape: bf16[128,256], index: 6, kind: input, shape index: {}]   ;;  %s1853_s7 = inlined_call_operand.vmem [shape: f32[1,256], index: 7, kind: input, shape index: {}]   ;;  %s1854_s8 = inlined_call_operand.vmem [shape: bf16[256,64], index: 8, kind: input, shape index: {}]   ;;  %s1855_s9 = inlined_call_operand.vmem [shape: f32[1,64], index: 9, kind: input, shape index: {}]   ;;  %s1856_s10 = inlined_call_operand.vmem [shape: f32[2,64,32], index: 10, kind: output, shape index: {}]  }
   0x1   :  { %s1558_s15 = smov 0  }
   0x2 LB: > { %s32_s16 = sadd.s32 1, %s1490_s14  ;;  %p1222_p0 = scmp.ge.s32.totalorder %s1494_s15, 1  ;;  %s1494_s15 = sphi %s1558_s15, %s20_s15   ;;  %s1490_s14 = sphi %s1556_s14, %s1858_s14   ;;  %s1486_s13 = sphi %s1554_s13, %s1857_s13  }
   0x3   : > { %p34_p1 = scmp.ge.s32.totalorder %s32_s16, 2  ;;  %p348_p2 = scmp.lt.s32.totalorder %s1494_s15, 3 }
   0x5   : > { %s1860_s16 = smov (%p34_p1, %s32_s16), 0  ;;  %p349_p3 = pnand %p1222_p0, %p348_p2 }
   0x6   : > { %p400_p4 = scmp.lt.s32.totalorder (!%p349_p3), %s1486_s13, 1 }
   0x7   : > { %352 = sbr.rel (%p349_p3) target bundleno = 958 (0x3be), region = 60 }
   0xc   : > { %v1496_v0 = vmov 1   ;;  %v1497_v1 = vmov 0   ;;  %s1862_s13 = smov (!%p400_p4, %s1486_s13), 1  ;;  %v1389_v10 = vld [vmem:[%s1850_s4 + $0x18] sm:$0xff]  ;;  %v1388_v11 = vld [vmem:[%s1850_s4 + $0x10] sm:$0xff]  ;;  %v1387_v12 = vld [vmem:[%s1850_s4 + $0x8] sm:$0xff] }
   0xd   : > { %1462 = vset.pattern.permute.xlu1 %v1496_v0  ;;  %1461 = vset.pattern.permute.xlu0 %v1497_v1  ;;  %s1572_s17 = sshll.u32 %s1862_s13, 6  ;;  %v1386_v13 = vld [vmem:[%s1850_s4] sm:$0xff]  ;;  %vm613_vm0 = vcmask 523264   ;;  %v1307_v47 = vld [vmem:[%s1852_s6 + $0x70] sm:$0xf]  ;;  %vm429_vm1 = vcmask 261120  }
   0xe   : > { %1463 = vset.pattern.permute.xlu2 %v1497_v1  ;;  %s407_s20 = scalar_lea.vmem %s1846_s0, %s1572_s17  ;;  %1422 = vmatpush.bf16.msra.mxu3 %v1389_v10  ;;  %v454_v15 = vld [vmem:[%s1848_s2] sm:$0x3]  ;;  %v1405_v48 = vld [vmem:[%s1852_s6 + $0x74] sm:$0xf0]  ;;  %v1403_v51 = vld [vmem:[%s1852_s6 + $0x64] sm:$0xf0]  ;;  %s417_s25 = scalar_lea.vmem %s1847_s1, %s1572_s17 }
   0xf   : > { %v442_v2 = vld [vmem:[%s407_s20 + $0x20] sm:$0xff]  ;;  %v444_v3 = vld [vmem:[%s407_s20 + $0x30] sm:$0xff]  ;;  %v443_v4 = vld [vmem:[%s407_s20 + $0x28] sm:$0xff]  ;;  %630 = vmatpush.bf16.msra.mxu0 %v1389_v10  ;;  %v1593_v17 = vperm.slane %v454_v15, 0  ;;  %v1595_v18 = vperm.slane %v454_v15, 1  ;;  %v1308_v50 = vor.u32 %v1405_v48, %v1307_v47  ;;  %s1792_s28 = scalar_lea.vmem %s1856_s10, %s1572_s17 }
  0x10   : > { %521 = vperm.xlu1 %1462, %v442_v2   ;;  %477 = vperm.xlu0 %1461, %v442_v2   ;;  %v445_v5 = vld [vmem:[%s407_s20 + $0x38] sm:$0xff]  ;;  %v438_v6 = vld [vmem:[%s407_s20] sm:$0xff]  ;;  %v439_v7 = vld [vmem:[%s407_s20 + $0x8] sm:$0xff] }
  0x11   : > { %487 = vperm.xlu2 %1463, %v444_v3   ;;  %v440_v8 = vld [vmem:[%s407_s20 + $0x10] sm:$0xff]  ;;  %v441_v9 = vld [vmem:[%s407_s20 + $0x18] sm:$0xff]  ;;  %v1602_v23 = vld [vmem:[%s1849_s3] ss:$0 sm:$0xff]  ;;  %1426 = vmatpush.bf16.msra.mxu2 %v1308_v50 }
  0x12   : > { %1423 = vmatpush.bf16.msra.mxu3 %v1388_v11  ;;  %v1299_v49 = vld [vmem:[%s1852_s6 + $0x60] sm:$0xf]  ;;  %769 = vmatpush.bf16.msra.mxu1 %v1308_v50  ;;  %v1291_v58 = vld [vmem:[%s1852_s6 + $0x50] sm:$0xf]  ;;  %v1401_v59 = vld [vmem:[%s1852_s6 + $0x54] sm:$0xf0] }
  0x13   : > { %631 = vmatpush.bf16.msra.mxu0 %v1388_v11  ;;  %v1300_v53 = vor.u32 %v1403_v51, %v1299_v49  ;;  %v1398_v47 = vld [vmem:[%s1852_s6 + $0x44] sm:$0xf]  ;;  %v1285_v48 = vld [vmem:[%s1852_s6 + $0x48] sm:$0xf0]  ;;  %v1396_v50 = vld [vmem:[%s1852_s6 + $0x34] sm:$0xf] }
  0x14   : > { %v1288_v49 = vor.u32 %v1398_v47, %v1285_v48  ;;  %v1277_v51 = vld [vmem:[%s1852_s6 + $0x38] sm:$0xf0]  ;;  %v1414_v47 = vld [vmem:[%s1854_s8 + $0x40] sm:$0xff] }
  0x15   : > { %1427 = vmatpush.bf16.msra.mxu2 %v1300_v53 }
  0x16   : > { %1424 = vmatpush.bf16.msra.mxu3 %v1387_v12  ;;  %770 = vmatpush.bf16.msra.mxu1 %v1300_v53  ;;  %v1394_v53 = vld [vmem:[%s1852_s6 + $0x24] sm:$0xf] }
  0x17   : > { %632 = vmatpush.bf16.msra.mxu0 %v1387_v12 }
  0x18   : > { %525 = vperm.xlu1 %1462, %v443_v4   ;;  %482 = vperm.xlu0 %1461, %v443_v4   ;;  %v1399_v4 = vld [vmem:[%s1852_s6 + $0x44] sm:$0xf0] }
  0x19   : > { %492 = vperm.xlu2 %1463, %v445_v5  }
  0x1a   : > { %1425 = vmatpush.bf16.msra.mxu3 %v1386_v13 }
  0x1b   : > { %633 = vmatpush.bf16.msra.mxu0 %v1386_v13 }
  0x20   : > { %533 = vperm.xlu1 %1462, %v445_v5   ;;  %1464 = vset.pattern.permute.xlu0 %v1496_v0 }
  0x21   : > { %529 = vperm.xlu0 %1464, %v444_v3   ;;  %457 = vperm.xlu2 %1463, %v438_v6   ;;  %v1283_v3 = vld [vmem:[%s1852_s6 + $0x40] sm:$0xf] }
  0x28   : > { %1465 = vset.pattern.permute.xlu1 %v1497_v1 }
  0x29   : > { %509 = vperm.xlu0 %1464, %v439_v7   ;;  %462 = vperm.xlu1 %1465, %v439_v7  }
  0x2a   : > { %1466 = vset.pattern.permute.xlu2 %v1496_v0 }
  0x2b   : > { %505 = vperm.xlu2 %1466, %v438_v6  }
  0x31   : > { %513 = vperm.xlu0 %1464, %v440_v8   ;;  %467 = vperm.xlu1 %1465, %v440_v8   ;;  %v1284_v8 = vor.u32 %v1399_v4, %v1283_v3 }
  0x33   : > { %1467 = vset.pattern.permute.xlu2 %v1497_v1 }
  0x34   : > { %472 = vperm.xlu2 %1467, %v441_v9  }
  0x39   : > { %1468 = vset.pattern.permute.xlu1 %v1496_v0  ;;  %v1292_v0 = vor.u32 %v1401_v59, %v1291_v58  ;;  %v1392_v58 = vld [vmem:[%s1852_s6 + $0x14] sm:$0xf]  ;;  %v1261_v59 = vld [vmem:[%s1852_s6 + $0x18] sm:$0xf0] }
  0x3a   : > { %517 = vperm.xlu1 %1468, %v441_v9  }
  0x3b   : > { %1428 = vmatpush.bf16.msra.mxu2 %v1292_v0  ;;  %771 = vmatpush.bf16.msra.mxu1 %v1292_v0  ;;  %v1390_v0 = vld [vmem:[%s1852_s6 + $0x4] sm:$0xf] }
  0x3f   : > { %1429 = vmatpush.bf16.msra.mxu2 %v1284_v8  ;;  %772 = vmatpush.bf16.msra.mxu1 %v1284_v8 }
  0x6b   : > { %v488_v14 = vpop.permute.xlu2 %487 }
  0x6c   : > { %v502_v36 = vmul.f32 %v1593_v17, %v488_v14 }
  0x73   : > { %v493_v16 = vpop.permute.xlu2 %492 }
  0x74   : > { %v503_v37 = vmul.f32 %v1593_v17, %v493_v16 }
  0x7b   : > { %v458_v25 = vpop.permute.xlu2 %457 }
  0x7c   : > { %v496_v43 = vmul.f32 %v1593_v17, %v458_v25 }
  0x82   : > { %v522_v19 = vpop.permute.xlu1 %521  ;;  %v478_v20 = vpop.permute.xlu0 %477 }
  0x83   : > { %v541_v21 = vmul.f32 %v1595_v18, %v522_v19  ;;  %v500_v22 = vmul.f32 %v1593_v17, %v478_v20 }
  0x85   : > { %v549_v24 = vadd.f32 %v541_v21, %v500_v22  ;;  %v506_v39 = vpop.permute.xlu2 %505 }
  0x86   : > { %v537_v44 = vmul.f32 %v1595_v18, %v506_v39  ;;  %v1309_v39 = vld [vmem:[%s1852_s6 + $0x78] sm:$0xf0] }
  0x87   : > { %v561_v30 = vadd.f32 %v1602_v23, %v549_v24 }
  0x88   : > { %v545_v52 = vadd.f32 %v537_v44, %v496_v43  ;;  %v1400_v44 = vld [vmem:[%s1852_s6 + $0x54] sm:$0xf] }
  0x89   : > { %v569_v33 = vmax.f32 %v561_v30, 0.0 }
  0x8a   : > { %v526_v26 = vpop.permute.xlu1 %525  ;;  %v483_v27 = vpop.permute.xlu0 %482  ;;  %v557_v62 = vadd.f32 %v1602_v23, %v545_v52  ;;  %v1280_v52 = vor.u32 %v1396_v50, %v1277_v51 }
  0x8b   : > { %v542_v28 = vmul.f32 %v1595_v18, %v526_v26  ;;  %v501_v29 = vmul.f32 %v1593_v17, %v483_v27 }
  0x8c   : > { %v565_v6 = vmax.f32 %v557_v62, 0.0 }
  0x8d   : > { %v550_v31 = vadd.f32 %v542_v28, %v501_v29  ;;  %v1275_v29 = vld [vmem:[%s1852_s6 + $0x30] sm:$0xf] }
  0x8e   : > { %v473_v15 = vpop.permute.xlu2 %472 }
  0x8f   : > { %v562_v32 = vadd.f32 %v1602_v23, %v550_v31  ;;  %v499_v19 = vmul.f32 %v1593_v17, %v473_v15 }
  0x91   : > { %v570_v34 = vmax.f32 %v562_v32, 0.0  ;;  %v1259_v32 = vld [vmem:[%s1852_s6 + $0x10] sm:$0xf] }
  0x92   : > { %v534_v35 = vpop.permute.xlu1 %533 }
  0x93   : > { %v544_v38 = vmul.f32 %v1595_v18, %v534_v35  ;;  %v530_v40 = vpop.permute.xlu0 %529  ;;  %v583_v41 = vpack.c.bf16 %v570_v34, %v569_v33  ;;  %v1393_v33 = vld [vmem:[%s1852_s6 + $0x14] sm:$0xf0]  ;;  %v1251_v35 = vld [vmem:[%s1852_s6] sm:$0xf] }
  0x94   : > { %v543_v42 = vmul.f32 %v1595_v18, %v530_v40  ;;  %v1260_v34 = vor.u32 %v1393_v33, %v1259_v32  ;;  %v1408_v32 = vld [vmem:[%s1854_s8 + $0x10] sm:$0xff]  ;;  %v1407_v33 = vld [vmem:[%s1854_s8 + $0x8] sm:$0xff] }
  0x95   : > { %1247 = vmatmul.msk.bf16.vlgmr.msra.gmra.mxu3 %vm613_vm0, %v583_v41  ;;  %v552_v45 = vadd.f32 %v544_v38, %v503_v37  ;;  %v1404_v38 = vld [vmem:[%s1852_s6 + $0x74] sm:$0xf]  ;;  %v1402_v41 = vld [vmem:[%s1852_s6 + $0x64] sm:$0xf] }
  0x96   : > { %v551_v46 = vadd.f32 %v543_v42, %v502_v36  ;;  %v1391_v36 = vld [vmem:[%s1852_s6 + $0x4] sm:$0xf0]  ;;  %v1312_v40 = vor.u32 %v1404_v38, %v1309_v39  ;;  %v1301_v42 = vld [vmem:[%s1852_s6 + $0x68] sm:$0xf0]  ;;  %v1418_v38 = vld [vmem:[%s1854_s8 + $0x60] sm:$0xff] }
  0x97   : > { %v564_v54 = vadd.f32 %v1602_v23, %v552_v45  ;;  %v1252_v37 = vor.u32 %v1391_v36, %v1251_v35  ;;  %v1304_v43 = vor.u32 %v1402_v41, %v1301_v42  ;;  %v1293_v45 = vld [vmem:[%s1852_s6 + $0x58] sm:$0xf0]  ;;  %v1406_v35 = vld [vmem:[%s1854_s8] sm:$0xff]  ;;  %v1420_v36 = vld [vmem:[%s1854_s8 + $0x70] sm:$0xff] }
  0x98   : > { %v563_v55 = vadd.f32 %v1602_v23, %v551_v46  ;;  %v1296_v46 = vor.u32 %v1400_v44, %v1293_v45  ;;  %v1417_v39 = vld [vmem:[%s1854_s8 + $0x58] sm:$0xff]  ;;  %v1416_v41 = vld [vmem:[%s1854_s8 + $0x50] sm:$0xff]  ;;  %v683_v44 = vld [vmem:[%s1853_s7] sm:$0x3] }
  0x99   : > { %v572_v1 = vmax.f32 %v564_v54, 0.0  ;;  %v1269_v54 = vld [vmem:[%s1852_s6 + $0x28] sm:$0xf0] }
  0x9a   : > { %v571_v2 = vmax.f32 %v563_v55, 0.0 }
  0x9b   : > { %v510_v56 = vpop.permute.xlu0 %509  ;;  %v463_v57 = vpop.permute.xlu1 %462 }
  0x9c   : > { %v538_v60 = vmul.f32 %v1595_v18, %v510_v56  ;;  %v497_v61 = vmul.f32 %v1593_v17, %v463_v57  ;;  %v584_v10 = vpack.c.bf16 %v572_v1, %v571_v2  ;;  %v1272_v56 = vor.u32 %v1394_v53, %v1269_v54  ;;  %v1470_v57 = vld [vmem:[%s1851_s5] ss:$0 sm:$0xff]  ;;  %v1253_v1 = vld [vmem:[%s1852_s6 + $0x8] sm:$0xf0] }
  0x9d   : > { %v1256_v2 = vor.u32 %v1390_v0, %v1253_v1 }
  0x9e   : > { %v546_v63 = vadd.f32 %v538_v60, %v497_v61  ;;  %v1264_v60 = vor.u32 %v1392_v58, %v1261_v59 }
  0xa0   : > { %v558_v5 = vadd.f32 %v1602_v23, %v546_v63 }
  0xa2   : > { %v566_v7 = vmax.f32 %v558_v5, 0.0 }
  0xa3   : > { %v468_v9 = vpop.permute.xlu1 %467  ;;  %v514_v11 = vpop.permute.xlu0 %513 }
  0xa4   : > { %v581_v12 = vpack.c.bf16 %v566_v7, %v565_v6  ;;  %v539_v13 = vmul.f32 %v1595_v18, %v514_v11  ;;  %v498_v14 = vmul.f32 %v1593_v17, %v468_v9  ;;  %v1397_v17 = vld [vmem:[%s1852_s6 + $0x34] sm:$0xf0] }
  0xa5   : > { %1248 = vmatmul.msk.bf16.gmra.mxu3 %vm613_vm0, %v584_v10  ;;  %v1276_v30 = vor.u32 %v1397_v17, %v1275_v29  ;;  %v1413_v17 = vld [vmem:[%s1854_s8 + $0x38] sm:$0xff] }
  0xa6   : > { %1245 = vmatmul.msk.bf16.vlgmr.msra.gmra.mxu0 %vm613_vm0, %v581_v12  ;;  %v547_v16 = vadd.f32 %v539_v13, %v498_v14  ;;  %983 = vmatpush.bf16.msrb.mxu3 %v1413_v17 }
  0xa7   : > { %1430 = vmatpush.bf16.msra.mxu2 %v1276_v30  ;;  %773 = vmatpush.bf16.msra.mxu1 %v1276_v30  ;;  %v1412_v30 = vld [vmem:[%s1854_s8 + $0x30] sm:$0xff] }
  0xa8   : > { %v559_v22 = vadd.f32 %v1602_v23, %v547_v16 }
  0xaa   : > { %v567_v26 = vmax.f32 %v559_v22, 0.0  ;;  %984 = vmatpush.bf16.msrb.mxu3 %v1412_v30 }
  0xac   : > { %v518_v20 = vpop.permute.xlu1 %517 }
  0xad   : > { %v540_v21 = vmul.f32 %v1595_v18, %v518_v20  ;;  %v1267_v18 = vld [vmem:[%s1852_s6 + $0x20] sm:$0xf] }
  0xaf   : > { %v548_v24 = vadd.f32 %v540_v21, %v499_v19 }
  0xb1   : > { %v560_v25 = vadd.f32 %v1602_v23, %v548_v24  ;;  %v1395_v23 = vld [vmem:[%s1852_s6 + $0x24] sm:$0xf0] }
  0xb2   : > { %v1268_v31 = vor.u32 %v1395_v23, %v1267_v18  ;;  %v1411_v18 = vld [vmem:[%s1854_s8 + $0x28] sm:$0xff]  ;;  %v1410_v23 = vld [vmem:[%s1854_s8 + $0x20] sm:$0xff] }
  0xb3   : > { %v568_v27 = vmax.f32 %v560_v25, 0.0  ;;  %985 = vmatpush.bf16.msrb.mxu3 %v1411_v18 }
  0xb4   : > { %1431 = vmatpush.bf16.msra.mxu2 %v1268_v31  ;;  %774 = vmatpush.bf16.msra.mxu1 %v1268_v31  ;;  %v1409_v31 = vld [vmem:[%s1854_s8 + $0x18] sm:$0xff] }
  0xb5   : > { %v582_v28 = vpack.c.bf16 %v568_v27, %v567_v26 }
  0xb7   : > { %1246 = vmatmul.msk.bf16.gmra.mxu0 %vm613_vm0, %v582_v28  ;;  %986 = vmatpush.bf16.msrb.mxu3 %v1410_v23 }
  0xb8   : > { %1432 = vmatpush.bf16.msra.mxu2 %v1260_v34  ;;  %775 = vmatpush.bf16.msra.mxu1 %v1260_v34  ;;  %v1421_v34 = vld [vmem:[%s1854_s8 + $0x78] sm:$0xff] }
  0xb9   : > { %1012 = vmatpush.bf16.msrb.mxu0 %v1421_v34 }
  0xbb   : > { %987 = vmatpush.bf16.msrb.mxu3 %v1409_v31 }
  0xbc   : > { %1433 = vmatpush.bf16.msra.mxu2 %v1252_v37  ;;  %776 = vmatpush.bf16.msra.mxu1 %v1252_v37  ;;  %v1419_v37 = vld [vmem:[%s1854_s8 + $0x68] sm:$0xff] }
  0xbd   : > { %1013 = vmatpush.bf16.msrb.mxu0 %v1420_v36 }
  0xbf   : > { %988 = vmatpush.bf16.msrb.mxu3 %v1408_v32 }
  0xc0   : > { %798 = vmatpush.bf16.msrb.mxu2 %v1312_v40 }
  0xc1   : > { %1014 = vmatpush.bf16.msrb.mxu0 %v1419_v37 }
  0xc3   : > { %989 = vmatpush.bf16.msrb.mxu3 %v1407_v33 }
  0xc4   : > { %799 = vmatpush.bf16.msrb.mxu2 %v1304_v43  ;;  %v1415_v43 = vld [vmem:[%s1854_s8 + $0x48] sm:$0xff] }
  0xc5   : > { %1015 = vmatpush.bf16.msrb.mxu0 %v1418_v38 }
  0xc7   : > { %990 = vmatpush.bf16.msrb.mxu3 %v1406_v35 }
  0xc8   : > { %800 = vmatpush.bf16.msrb.mxu2 %v1296_v46  ;;  %v685_v46 = vperm.slane %v683_v44, 0 }
  0xc9   : > { %1016 = vmatpush.bf16.msrb.mxu0 %v1417_v39 }
  0xcc   : > { %801 = vmatpush.bf16.msrb.mxu2 %v1288_v49 }
  0xcd   : > { %1017 = vmatpush.bf16.msrb.mxu0 %v1416_v41 }
  0xd0   : > { %802 = vmatpush.bf16.msrb.mxu2 %v1280_v52 }
  0xd1   : > { %1018 = vmatpush.bf16.msrb.mxu0 %v1415_v43 }
  0xd4   : > { %803 = vmatpush.bf16.msrb.mxu2 %v1272_v56 }
  0xd5   : > { %1019 = vmatpush.bf16.msrb.mxu0 %v1414_v47 }
  0xd8   : > { %804 = vmatpush.bf16.msrb.mxu2 %v1264_v60 }
  0xdc   : > { %805 = vmatpush.bf16.msrb.mxu2 %v1256_v2 }
 0x118   : > { %v645_v55 = vpop.f32.mrf.mxu3 }
 0x119   : > { %v646_v61 = vadd.f32 %v1470_v57, %v645_v55 }
 0x11b   : > { %v659_v3 = vmax.f32 %v646_v61, 0.0 }
 0x120   : > { %v647_v62 = vpop.f32.mrf.mxu3 }
 0x121   : > { %v648_v63 = vadd.f32 %v1470_v57, %v647_v62 }
 0x123   : > { %v660_v4 = vmax.f32 %v648_v63, 0.0  ;;  %v635_v5 = vpop.f32.mrf.mxu0  ;;  %v686_v63 = vperm.slane %v683_v44, 1 }
 0x124   : > { %v636_v8 = vadd.f32 %v1470_v57, %v635_v5 }
 0x125   : > { %v681_v6 = vpack.c.bf16 %v660_v4, %v659_v3 }
 0x126   : > { %v655_v11 = vmax.f32 %v636_v8, 0.0 }
 0x127   : > { %787 = vmatmul.bf16.vlgmr.msra.gmra.mxu2 %v681_v6 }
 0x128   : > { %v650_v7 = vpop.f32.mrf.mxu3 }
 0x129   : > { %v651_v13 = vadd.f32 %v1470_v57, %v650_v7 }
 0x12b   : > { %v637_v9 = vpop.f32.mrf.mxu0  ;;  %v661_v19 = vmax.f32 %v651_v13, 0.0 }
 0x12c   : > { %v638_v10 = vadd.f32 %v1470_v57, %v637_v9 }
 0x12e   : > { %v656_v12 = vmax.f32 %v638_v10, 0.0 }
 0x130   : > { %v652_v14 = vpop.f32.mrf.mxu3  ;;  %v679_v15 = vpack.c.bf16 %v656_v12, %v655_v11 }
 0x131   : > { %v653_v16 = vadd.f32 %v1470_v57, %v652_v14 }
 0x132   : > { %777 = vmatmul.bf16.vlgmr.msra.gmra.mxu1 %v679_v15 }
 0x133   : > { %v662_v20 = vmax.f32 %v653_v16, 0.0 }
 0x134   : > { %v640_v21 = vpop.f32.mrf.mxu0 }
 0x135   : > { %v682_v22 = vpack.c.bf16 %v662_v20, %v661_v19  ;;  %v641_v24 = vadd.f32 %v1470_v57, %v640_v21 }
 0x137   : > { %792 = vmatmul.bf16.gmra.mxu2 %v682_v22  ;;  %v657_v27 = vmax.f32 %v641_v24, 0.0 }
 0x13c   : > { %v642_v25 = vpop.f32.mrf.mxu0 }
 0x13d   : > { %v643_v26 = vadd.f32 %v1470_v57, %v642_v25 }
 0x13f   : > { %v658_v28 = vmax.f32 %v643_v26, 0.0 }
 0x141   : > { %v680_v29 = vpack.c.bf16 %v658_v28, %v657_v27 }
 0x143   : > { %782 = vmatmul.bf16.gmra.mxu1 %v680_v29 }
 0x147   : > { %806 = vmatmul.bf16.vlgmr.msrb.gmra.mxu2 %v679_v15 }
 0x157   : > { %811 = vmatmul.bf16.gmra.mxu2 %v680_v29 }
 0x167   : > { %816 = vmatmul.bf16.gmra.mxu2 %v681_v6 }
 0x177   : > { %821 = vmatmul.bf16.gmra.mxu2 %v682_v22 }
 0x1aa   : > { %v788_v40 = vpop.f32.mrf.mxu2 }
 0x1ab   : > { %v789_v7 = vadd.f32 %v788_v40, %v685_v46 }
 0x1ad   : > { %v835_v11 = vmax.f32 %v789_v7, 0.0 }
 0x1af   : > { %v778_v42 = vpop.f32.mrf.mxu1 }
 0x1b0   : > { %v779_v48 = vadd.f32 %v778_v42, %v685_v46  ;;  %v1471_v42 = vld [vmem:[%s1855_s9] ss:$0 sm:$0xff] }
 0x1b2   : > { %v790_v45 = vpop.f32.mrf.mxu2  ;;  %v827_v51 = vmax.f32 %v779_v48, 0.0 }
 0x1b3   : > { %v791_v4 = vadd.f32 %v790_v45, %v685_v46 }
 0x1b5   : > { %v837_v9 = vmax.f32 %v791_v4, 0.0 }
 0x1b7   : > { %v780_v49 = vpop.f32.mrf.mxu1  ;;  %v879_v12 = vpack.c.bf16 %v837_v9, %v835_v11 }
 0x1b8   : > { %v781_v50 = vadd.f32 %v780_v49, %v685_v46 }
 0x1ba   : > { %v829_v52 = vmax.f32 %v781_v50, 0.0  ;;  %v793_v53 = vpop.f32.mrf.mxu2 }
 0x1bb   : > { %v794_v21 = vadd.f32 %v793_v53, %v685_v46 }
 0x1bc   : > { %v875_v54 = vpack.c.bf16 %v829_v52, %v827_v51 }
 0x1bd   : > { %v839_v26 = vmax.f32 %v794_v21, 0.0 }
 0x1be   : > { %991 = vmatmul.bf16.vlgmr.msrb.gmra.mxu3 %v875_v54 }
 0x1c0   : > { %v783_v55 = vpop.f32.mrf.mxu1 }
 0x1c1   : > { %v784_v57 = vadd.f32 %v783_v55, %v685_v46 }
 0x1c2   : > { %v795_v56 = vpop.f32.mrf.mxu2 }
 0x1c3   : > { %v831_v61 = vmax.f32 %v784_v57, 0.0  ;;  %v796_v16 = vadd.f32 %v795_v56, %v685_v46 }
 0x1c5   : > { %v841_v24 = vmax.f32 %v796_v16, 0.0 }
 0x1c7   : > { %v881_v27 = vpack.c.bf16 %v841_v24, %v839_v26 }
 0x1c8   : > { %v785_v58 = vpop.f32.mrf.mxu1 }
 0x1c9   : > { %v786_v59 = vadd.f32 %v785_v58, %v685_v46  ;;  %v452_v58 = vld [vmem:[%s417_s25 + $0x30] sm:$0xff] }
 0x1ca   : > { %v807_v60 = vpop.f32.mrf.mxu2 }
 0x1cb   : > { %v833_v62 = vmax.f32 %v786_v59, 0.0  ;;  %v808_v1 = vadd.f32 %v807_v60, %v686_v63  ;;  %v453_v59 = vld [vmem:[%s417_s25 + $0x38] sm:$0xff]  ;;  %v450_v60 = vld [vmem:[%s417_s25 + $0x20] sm:$0xff] }
 0x1cd   : > { %v877_v0 = vpack.c.bf16 %v833_v62, %v831_v61  ;;  %v828_v5 = vmax.f32 %v808_v1, 0.0  ;;  %v1048_v61 = vpack.c.bf16 %v453_v59, %v452_v58  ;;  %v451_v62 = vld [vmem:[%s417_s25 + $0x28] sm:$0xff] }
 0x1ce   : > { %v1047_v1 = vpack.c.bf16 %v451_v62, %v450_v60 }
 0x1cf   : > { %996 = vmatmul.bf16.gmra.mxu3 %v877_v0  ;;  %1081 = vmatpush.bf16.msrb.mxu1 %v1048_v61 }
 0x1d2   : > { %v809_v2 = vpop.f32.mrf.mxu2 }
 0x1d3   : > { %v810_v3 = vadd.f32 %v809_v2, %v686_v63  ;;  %v448_v2 = vld [vmem:[%s417_s25 + $0x10] sm:$0xff]  ;;  %1082 = vmatpush.bf16.msrb.mxu1 %v1047_v1 }
 0x1d5   : > { %v830_v6 = vmax.f32 %v810_v3, 0.0  ;;  %v449_v3 = vld [vmem:[%s417_s25 + $0x18] sm:$0xff] }
 0x1d6   : > { %v1046_v4 = vpack.c.bf16 %v449_v3, %v448_v2 }
 0x1d7   : > { %v876_v8 = vpack.c.bf16 %v830_v6, %v828_v5  ;;  %v446_v5 = vld [vmem:[%s417_s25] sm:$0xff]  ;;  %v447_v6 = vld [vmem:[%s417_s25 + $0x8] sm:$0xff] }
 0x1d8   : > { %1083 = vmatpush.bf16.msrb.mxu1 %v1046_v4 }
 0x1d9   : > { %1020 = vmatmul.bf16.vlgmr.msrb.gmra.mxu0 %v876_v8 }
 0x1da   : > { %v812_v10 = vpop.f32.mrf.mxu2 }
 0x1db   : > { %v813_v13 = vadd.f32 %v812_v10, %v686_v63  ;;  %v1045_v10 = vpack.c.bf16 %v447_v6, %v446_v5 }
 0x1dd   : > { %v832_v19 = vmax.f32 %v813_v13, 0.0  ;;  %1084 = vmatpush.bf16.msrb.mxu1 %v1045_v10 }
 0x1df   : > { %1001 = vmatmul.bf16.gmra.mxu3 %v879_v12 }
 0x1e2   : > { %v814_v14 = vpop.f32.mrf.mxu2 }
 0x1e3   : > { %v815_v15 = vadd.f32 %v814_v14, %v686_v63 }
 0x1e5   : > { %v834_v20 = vmax.f32 %v815_v15, 0.0 }
 0x1e7   : > { %v878_v22 = vpack.c.bf16 %v834_v20, %v832_v19 }
 0x1e9   : > { %1025 = vmatmul.bf16.gmra.mxu0 %v878_v22 }
 0x1ea   : > { %v817_v25 = vpop.f32.mrf.mxu2 }
 0x1eb   : > { %v818_v28 = vadd.f32 %v817_v25, %v686_v63 }
 0x1ed   : > { %v836_v30 = vmax.f32 %v818_v28, 0.0  ;;  %v1498_v28 = vmov 0.0  }
 0x1ee   : > { %430 = vst.msk [vmem:[%s1792_s28] sm:$0xff] %vm429_vm1, %v1498_v28 }
 0x1ef   : > { %1006 = vmatmul.bf16.gmra.mxu3 %v881_v27  ;;  %431 = vst.msk [vmem:[%s1792_s28 + $0x8] sm:$0xff] %vm429_vm1, %v1498_v28 }
 0x1f0   : > { %432 = vst.msk [vmem:[%s1792_s28 + $0x10] sm:$0xff] %vm429_vm1, %v1498_v28 }
 0x1f1   : > { %433 = vst.msk [vmem:[%s1792_s28 + $0x18] sm:$0xff] %vm429_vm1, %v1498_v28 }
 0x1f2   : > { %v819_v29 = vpop.f32.mrf.mxu2  ;;  %434 = vst.msk [vmem:[%s1792_s28 + $0x20] sm:$0xff] %vm429_vm1, %v1498_v28 }
 0x1f3   : > { %v820_v17 = vadd.f32 %v819_v29, %v686_v63  ;;  %435 = vst.msk [vmem:[%s1792_s28 + $0x28] sm:$0xff] %vm429_vm1, %v1498_v28 }
 0x1f4   : > { %436 = vst.msk [vmem:[%s1792_s28 + $0x30] sm:$0xff] %vm429_vm1, %v1498_v28 }
 0x1f5   : > { %v838_v18 = vmax.f32 %v820_v17, 0.0  ;;  %437 = vst.msk [vmem:[%s1792_s28 + $0x38] sm:$0xff] %vm429_vm1, %v1498_v28 }
 0x1f7   : > { %v880_v23 = vpack.c.bf16 %v838_v18, %v836_v30  ;;  %v1106_v30 = vld [vmem:[%s1792_s28] sm:$0xff] }
 0x1f9   : > { %1030 = vmatmul.bf16.gmra.mxu0 %v880_v23 }
 0x1fa   : > { %v822_v31 = vpop.f32.mrf.mxu2 }
 0x1fb   : > { %v823_v32 = vadd.f32 %v822_v31, %v686_v63  ;;  %v1107_v31 = vld [vmem:[%s1792_s28 + $0x8] sm:$0xff] }
 0x1fd   : > { %v840_v35 = vmax.f32 %v823_v32, 0.0 }
 0x202   : > { %v824_v33 = vpop.f32.mrf.mxu2 }
 0x203   : > { %v825_v34 = vadd.f32 %v824_v33, %v686_v63 }
 0x205   : > { %v842_v36 = vmax.f32 %v825_v34, 0.0  ;;  %v1108_v34 = vld [vmem:[%s1792_s28 + $0x10] sm:$0xff] }
 0x207   : > { %v882_v37 = vpack.c.bf16 %v842_v36, %v840_v35 }
 0x209   : > { %1035 = vmatmul.bf16.gmra.mxu0 %v882_v37  ;;  %v1109_v37 = vld [vmem:[%s1792_s28 + $0x18] sm:$0xff] }
 0x241   : > { %v992_v38 = vpop.f32.mrf.mxu3 }
 0x242   : > { %v993_v43 = vadd.f32 %v1471_v42, %v992_v38 }
 0x249   : > { %v994_v39 = vpop.f32.mrf.mxu3 }
 0x24a   : > { %v995_v44 = vadd.f32 %v1471_v42, %v994_v39 }
 0x252   : > { %v997_v41 = vpop.f32.mrf.mxu3 }
 0x253   : > { %v998_v52 = vadd.f32 %v1471_v42, %v997_v41 }
 0x256   : > { %v1021_v40 = vpop.f32.mrf.mxu0 }
 0x257   : > { %v1022_v46 = vadd.f32 %v1021_v40, %v993_v43  ;;  %v1110_v40 = vld [vmem:[%s1792_s28 + $0x20] sm:$0xff]  ;;  %v1111_v43 = vld [vmem:[%s1792_s28 + $0x28] sm:$0xff] }
 0x25a   : > { %v999_v49 = vpop.f32.mrf.mxu3 }
 0x25b   : > { %v1000_v53 = vadd.f32 %v1471_v42, %v999_v49  ;;  %v1113_v49 = vld [vmem:[%s1792_s28 + $0x38] sm:$0xff] }
 0x25e   : > { %v1023_v45 = vpop.f32.mrf.mxu0 }
 0x25f   : > { %v1024_v47 = vadd.f32 %v1023_v45, %v995_v44 }
 0x261   : > { %v1041_v48 = vpack.c.bf16 %v1024_v47, %v1022_v46  ;;  %v1112_v46 = vld [vmem:[%s1792_s28 + $0x30] sm:$0xff] }
 0x262   : > { %v1002_v51 = vpop.f32.mrf.mxu3 }
 0x263   : > { %1049 = vxpose.xlu2.c.b16.start [1/4] (short) (narrow) %v1041_v48, 64  ;;  %v1003_v7 = vadd.f32 %v1471_v42, %v1002_v51 }
 0x266   : > { %v1026_v50 = vpop.f32.mrf.mxu0 }
 0x267   : > { %v1027_v55 = vadd.f32 %v1026_v50, %v998_v52 }
 0x26a   : > { %v1004_v63 = vpop.f32.mrf.mxu3 }
 0x26b   : > { %v1005_v8 = vadd.f32 %v1471_v42, %v1004_v63 }
 0x26e   : > { %v1028_v54 = vpop.f32.mrf.mxu0 }
 0x26f   : > { %v1029_v56 = vadd.f32 %v1028_v54, %v1000_v53 }
 0x271   : > { %v1042_v57 = vpack.c.bf16 %v1029_v56, %v1027_v55 }
 0x272   : > { %v1007_v13 = vpop.f32.mrf.mxu3 }
 0x273   : > { %1050 = vxpose.xlu2.c.b16.cont [2/4] (short) (narrow) %v1042_v57, 64  ;;  %v1008_v19 = vadd.f32 %v1471_v42, %v1007_v13 }
 0x276   : > { %v1031_v0 = vpop.f32.mrf.mxu0 }
 0x277   : > { %v1032_v11 = vadd.f32 %v1031_v0, %v1003_v7 }
 0x27a   : > { %v1009_v16 = vpop.f32.mrf.mxu3 }
 0x27b   : > { %v1010_v20 = vadd.f32 %v1471_v42, %v1009_v16 }
 0x27e   : > { %v1033_v9 = vpop.f32.mrf.mxu0 }
 0x27f   : > { %v1034_v12 = vadd.f32 %v1033_v9, %v1005_v8 }
 0x281   : > { %v1043_v14 = vpack.c.bf16 %v1034_v12, %v1032_v11 }
 0x283   : > { %1051 = vxpose.xlu2.c.b16.cont [3/4] (short) (narrow) %v1043_v14, 64 }
 0x286   : > { %v1036_v15 = vpop.f32.mrf.mxu0 }
 0x287   : > { %v1037_v22 = vadd.f32 %v1036_v15, %v1008_v19 }
 0x28e   : > { %v1038_v21 = vpop.f32.mrf.mxu0 }
 0x28f   : > { %v1039_v24 = vadd.f32 %v1038_v21, %v1010_v20 }
 0x291   : > { %v1044_v25 = vpack.c.bf16 %v1039_v24, %v1037_v22 }
 0x293   : > { %1052 = vxpose.xlu2.c.b16.end [4/4] (short) (narrow) %v1044_v25, 64 }
 0x304   : > { %v1057_v26 = vpop.trf.xlu2 }
 0x305   : > { %1377 = vmatmul.msk.bf16.vlgmr.msrb.gmra.mxu1 %vm613_vm0, %v1057_v26 }
 0x314   : > { %v1058_v27 = vpop.trf.xlu2 }
 0x315   : > { %1378 = vmatmul.msk.bf16.gmra.mxu1 %vm613_vm0, %v1058_v27 }
 0x324   : > { %v1059_v29 = vpop.trf.xlu2 }
 0x325   : > { %1379 = vmatmul.msk.bf16.gmra.mxu1 %vm613_vm0, %v1059_v29 }
 0x334   : > { %v1060_v17 = vpop.trf.xlu2 }
 0x335   : > { %1380 = vmatmul.msk.bf16.gmra.mxu1 %vm613_vm0, %v1060_v17 }
 0x382   : > { %v1086_v18 = vpop.f32.mrf.mxu1 }
 0x383   : > { %v1114_v23 = vadd.f32 %v1106_v30, %v1086_v18 }
 0x385   : > { %1123 = vst.msk [vmem:[%s1792_s28] sm:$0xff] %vm429_vm1, %v1114_v23 }
 0x38a   : > { %v1088_v32 = vpop.f32.mrf.mxu1 }
 0x38b   : > { %v1115_v33 = vadd.f32 %v1107_v31, %v1088_v32 }
 0x38d   : > { %1124 = vst.msk [vmem:[%s1792_s28 + $0x8] sm:$0xff] %vm429_vm1, %v1115_v33 }
 0x392   : > { %v1091_v35 = vpop.f32.mrf.mxu1 }
 0x393   : > { %v1116_v36 = vadd.f32 %v1108_v34, %v1091_v35 }
 0x395   : > { %1125 = vst.msk [vmem:[%s1792_s28 + $0x10] sm:$0xff] %vm429_vm1, %v1116_v36 }
 0x39a   : > { %v1093_v38 = vpop.f32.mrf.mxu1 }
 0x39b   : > { %v1117_v39 = vadd.f32 %v1109_v37, %v1093_v38 }
 0x39d   : > { %1126 = vst.msk [vmem:[%s1792_s28 + $0x18] sm:$0xff] %vm429_vm1, %v1117_v39 }
 0x3a2   : > { %v1096_v41 = vpop.f32.mrf.mxu1 }
 0x3a3   : > { %v1118_v42 = vadd.f32 %v1110_v40, %v1096_v41 }
 0x3a5   : > { %1127 = vst.msk [vmem:[%s1792_s28 + $0x20] sm:$0xff] %vm429_vm1, %v1118_v42 }
 0x3aa   : > { %v1098_v44 = vpop.f32.mrf.mxu1 }
 0x3ab   : > { %v1119_v45 = vadd.f32 %v1111_v43, %v1098_v44 }
 0x3ad   : > { %1128 = vst.msk [vmem:[%s1792_s28 + $0x28] sm:$0xff] %vm429_vm1, %v1119_v45 }
 0x3b2   : > { %v1101_v47 = vpop.f32.mrf.mxu1 }
 0x3b3   : > { %v1120_v48 = vadd.f32 %v1112_v46, %v1101_v47 }
 0x3b5   : > { %1129 = vst.msk [vmem:[%s1792_s28 + $0x30] sm:$0xff] %vm429_vm1, %v1120_v48 }
 0x3ba   : > { %v1103_v50 = vpop.f32.mrf.mxu1 }
 0x3bb   : > { %v1121_v51 = vadd.f32 %v1113_v49, %v1103_v50 }
 0x3bd   : > { %1130 = vst.msk [vmem:[%s1792_s28 + $0x38] sm:$0xff] %vm429_vm1, %v1121_v51 }
 0x3be PF: > { %s20_s15 = sadd.s32 1, %s1494_s15   ;;  %s1857_s13 = smov %s1490_s14 }
 0x3bf   : > { %p17_p5 = scmp.ge.s32.totalorder %s20_s15, 4   ;;  %s1858_s14 = smov %s1860_s16 }
 0x3c1   :  { %19 = sbr.rel (!%p17_p5) target bundleno = 2 (0x2), region = 97 }

</bundles_post_ra>
